<compile_context>
chip_gen: v7x
topology: tpu7x:2x2x1
jax: 0.10.0
libtpu: 0.0.40
codegen_flags: <defaults>
</compile_context>

<pallas_src>
import jax
import jax.numpy as jnp
from jax.experimental import pallas as pl
from jax.experimental.pallas import tpu as pltpu

_LANE = 128
_NEG = -1e30  # fill for padded class lanes (finite in f32, so no inf/NaN arithmetic)


def _mlp_kernel(x_ref, norm_ref, w1_ref, wh_ref, w5_ref, b_ref, out_ref):
    # In-kernel input normalization in f32 (VPU work, free while DMA-bound).
    x = x_ref[...]                                    # (tb, F) f32
    xn = (x - norm_ref[0:1, :]) * norm_ref[1:2, :]    # (x - mean) * inv_std

    # Layer 1: (tb, F) x (F, H)
    h = jnp.dot(xn.astype(jnp.bfloat16), w1_ref[...],
                preferred_element_type=jnp.float32)
    h = jnp.maximum(h + b_ref[0:1, :], 0.0)

    # Hidden layers 2-4: stacked (3, H, H) weights, static slices.
    for i in range(3):
        h = jnp.dot(h.astype(jnp.bfloat16), wh_ref[i],
                    preferred_element_type=jnp.float32)
        h = jnp.maximum(h + b_ref[i + 1:i + 2, :], 0.0)

    # Output layer (padded class lanes carry -1e30 bias -> exp() contribution is 0).
    logits = jnp.dot(h.astype(jnp.bfloat16), w5_ref[...],
                     preferred_element_type=jnp.float32) + b_ref[4:5, :]

    # LogSoftmax(dim=1) in f32.
    m = jnp.max(logits, axis=1, keepdims=True)
    lse = jnp.log(jnp.sum(jnp.exp(logits - m), axis=1, keepdims=True)) + m
    out_ref[...] = (logits - lse).astype(out_ref.dtype)


def _round_up(n, m):
    return ((n + m - 1) // m) * m


def _pad2d(a, rows, cols, fill=0.0):
    r, c = a.shape
    if r == rows and c == cols:
        return a
    return jnp.pad(a, ((0, rows - r), (0, cols - c)), constant_values=fill)


def mlp_forward(x, means, stds, params, *, tb_max=2048):
    """params: list of (W, b) with W shaped (in, out), b shaped (1, out). Returns (B, classes) f32."""
    B, F = x.shape
    classes = params[-1][0].shape[1]
    hidden = params[1][0].shape[0]

    h_pad = _round_up(hidden, _LANE)   # 100 -> 128
    c_pad = _round_up(classes, _LANE)  # classes -> 128

    # ---- Resident operands (tiny; stay in VMEM across all grid steps) ----
    norm = jnp.concatenate(
        [means.astype(jnp.float32),
         (1.0 / (stds.astype(jnp.float32) + 1e-06))], axis=0)          # (2, F) f32

    w1, b1 = params[0]
    w1_p = _pad2d(w1, F, h_pad).astype(jnp.bfloat16)                   # (F, 128)
    wh = jnp.stack([_pad2d(w, h_pad, h_pad) for (w, _) in params[1:4]],
                   axis=0).astype(jnp.bfloat16)                        # (3, 128, 128)
    w5, b5 = params[-1]
    w5_p = _pad2d(w5, h_pad, c_pad).astype(jnp.bfloat16)               # (128, 128)

    bias_rows = [_pad2d(b1, 1, h_pad)]
    bias_rows += [_pad2d(b, 1, h_pad) for (_, b) in params[1:4]]
    bias_rows += [_pad2d(b5, 1, c_pad, fill=_NEG)]                     # mask padded classes
    bias_rows += [jnp.zeros((1, h_pad), jnp.float32)] * 3              # pad to 8 sublanes
    biases = jnp.concatenate(bias_rows, axis=0).astype(jnp.float32)    # (8, 128)

    # ---- Batch tiling: bounded padding, >=2 grid steps for v7x when possible ----
    B8 = _round_up(B, 8)
    n_tiles = pl.cdiv(B8, tb_max)
    if B8 >= 16:
        n_tiles = max(n_tiles, 2)          # keep both v7x TensorCores busy
    tb = _round_up(pl.cdiv(B8, n_tiles), 8)
    b_pad = n_tiles * tb
    x_in = x if b_pad == B else jnp.pad(x, ((0, b_pad - B), (0, 0)))
    x_in = x_in.astype(jnp.float32)
    grid = (n_tiles,)

    resident = [norm, w1_p, wh, w5_p, biases]
    in_specs = [
        pl.BlockSpec((tb, F), lambda i: (i, 0)),            # x: tiled over batch
        pl.BlockSpec(norm.shape, lambda i: (0, 0)),
        pl.BlockSpec(w1_p.shape, lambda i: (0, 0)),
        pl.BlockSpec(wh.shape, lambda i: (0, 0, 0)),
        pl.BlockSpec(w5_p.shape, lambda i: (0, 0)),
        pl.BlockSpec(biases.shape, lambda i: (0, 0)),
    ]

    resident_bytes = sum(int(a.size) * a.dtype.itemsize for a in resident)
    tile_bytes = tb * F * 4 + tb * c_pad * 4
    vmem_limit = int(min(64 * 1024 * 1024,
                         2 * tile_bytes + 2 * resident_bytes + 24 * 1024 * 1024))

    flops = 2 * b_pad * (F * h_pad + 3 * h_pad * h_pad + h_pad * c_pad)
    bytes_accessed = b_pad * F * 4 + b_pad * c_pad * 4 + resident_bytes

    out = pl.pallas_call(
        _mlp_kernel,
        out_shape=jax.ShapeDtypeStruct((b_pad, c_pad), jnp.float32),
        grid=grid,
        in_specs=in_specs,
        out_specs=pl.BlockSpec((tb, c_pad), lambda i: (i, 0)),
        compiler_params=pltpu.CompilerParams(
            dimension_semantics=("parallel",),
            vmem_limit_bytes=vmem_limit),
        cost_estimate=pl.CostEstimate(
            flops=flops,
            transcendentals=b_pad * (c_pad + 1),
            bytes_accessed=bytes_accessed),
    )(x_in, *resident)

    return out[:B, :classes]


def init_params(key, classes):
    """Deterministic init mimicking torch.nn.Linear defaults (uniform +/- 1/sqrt(fan_in))."""
    dims = [(330, 100), (100, 100), (100, 100), (100, 100), (100, classes)]
    params = []
    for (fan_in, fan_out) in dims:
        key, kw, kb = jax.random.split(key, 3)
        bound = 1.0 / jnp.sqrt(jnp.float32(fan_in))
        # torch stores W as (out, in); generate that way then transpose to (in, out).
        w_t = jax.random.uniform(kw, (fan_out, fan_in), jnp.float32, -bound, bound)
        b = jax.random.uniform(kb, (1, fan_out), jnp.float32, -bound, bound)
        params.append((w_t.T, b))
    return params


def reference_forward(x, means, stds, params):
    h = (x - means) / (stds + 1e-06)
    for i, (w, b) in enumerate(params):
        h = h @ w + b
        if i < len(params) - 1:
            h = jnp.maximum(h, 0.0)
    return jax.nn.log_softmax(h, axis=1)


if __name__ == "__main__":
    CLASSES = 10
    key = jax.random.PRNGKey(0)
    kx, km, ks, kp = jax.random.split(key, 4)

    means = jax.random.normal(km, (1, 330), jnp.float32) * 0.1
    stds = jax.random.uniform(ks, (1, 330), jnp.float32, 0.5, 1.5)
    params = init_params(kp, CLASSES)

    # Case 1: tiny batch (single grid step, no padding).
    x_small = jax.random.normal(kx, (8, 330), jnp.float32)
    out_small = jax.block_until_ready(mlp_forward(x_small, means, stds, params))
    ref_small = reference_forward(x_small, means, stds, params)
    assert out_small.shape == (8, CLASSES)
    assert jnp.allclose(out_small, ref_small, atol=5e-2, rtol=5e-2), "mismatch (B=8)"

    # Case 2: batch that exercises the 2-step grid + batch-row padding path.
    x_med = jax.random.normal(kx, (20, 330), jnp.float32)
    out_med = jax.block_until_ready(mlp_forward(x_med, means, stds, params))
    ref_med = reference_forward(x_med, means, stds, params)
    assert out_med.shape == (20, CLASSES)
    assert jnp.allclose(out_med, ref_med, atol=5e-2, rtol=5e-2), "mismatch (B=20)"

    print("KERNEL_OK")
</pallas_src>

<mosaic_0001>
module attributes {stable_mosaic.version = 11 : i64} {
  func.func @_mlp_kernel(%arg0: i32, %arg1: memref<8x330xf32, #tpu.memory_space<vmem>>, %arg2: memref<2x330xf32, #tpu.memory_space<vmem>>, %arg3: memref<330x128xbf16, #tpu.memory_space<vmem>>, %arg4: memref<3x128x128xbf16, #tpu.memory_space<vmem>>, %arg5: memref<128x128xbf16, #tpu.memory_space<vmem>>, %arg6: memref<8x128xf32, #tpu.memory_space<vmem>>, %arg7: memref<8x128xf32, #tpu.memory_space<vmem>>) attributes {dimension_semantics = [#tpu.dimension_semantics<parallel>], iteration_bounds = array<i64: 1>, scalar_prefetch = 0 : i64, scratch_operands = 0 : i64, tpu.core_type = #tpu.core_type<tc>, window_params = [{transform_indices = @transform_0, window_bounds = array<i64: 8, 330>}, {pipeline_mode = #tpu.pipeline_mode<synchronous>, transform_indices = @transform_1, window_bounds = array<i64: 2, 330>}, {pipeline_mode = #tpu.pipeline_mode<synchronous>, transform_indices = @transform_2, window_bounds = array<i64: 330, 128>}, {pipeline_mode = #tpu.pipeline_mode<synchronous>, transform_indices = @transform_3, window_bounds = array<i64: 3, 128, 128>}, {pipeline_mode = #tpu.pipeline_mode<synchronous>, transform_indices = @transform_4, window_bounds = array<i64: 128, 128>}, {pipeline_mode = #tpu.pipeline_mode<synchronous>, transform_indices = @transform_5, window_bounds = array<i64: 8, 128>}, {transform_indices = @transform_6, window_bounds = array<i64: 8, 128>}]} {
    %c0 = arith.constant 0 : index
    %c0_0 = arith.constant 0 : index
    %0 = vector.load %arg1[%c0, %c0_0] : memref<8x330xf32, #tpu.memory_space<vmem>>, vector<8x330xf32>
    %c0_1 = arith.constant 0 : index
    %c0_2 = arith.constant 0 : index
    %1 = vector.load %arg2[%c0_1, %c0_2] : memref<2x330xf32, #tpu.memory_space<vmem>>, vector<1x330xf32>
    %2 = vector.broadcast %1 : vector<1x330xf32> to vector<8x330xf32>
    %3 = arith.subf %0, %2 : vector<8x330xf32>
    %c1 = arith.constant 1 : index
    %c0_3 = arith.constant 0 : index
    %4 = vector.load %arg2[%c1, %c0_3] : memref<2x330xf32, #tpu.memory_space<vmem>>, vector<1x330xf32>
    %5 = vector.broadcast %4 : vector<1x330xf32> to vector<8x330xf32>
    %6 = arith.mulf %3, %5 : vector<8x330xf32>
    %7 = arith.truncf %6 : vector<8x330xf32> to vector<8x330xbf16>
    %c0_4 = arith.constant 0 : index
    %c0_5 = arith.constant 0 : index
    %8 = vector.load %arg3[%c0_4, %c0_5] : memref<330x128xbf16, #tpu.memory_space<vmem>>, vector<330x128xbf16>
    %cst = arith.constant dense<0.000000e+00> : vector<8x128xf32>
    %9 = tpu.matmul %7, %8, %cst {dimension_numbers = #tpu.dot_dimension_numbers<[1], [0], [0], [1], [0, 0, 1, 1], [], []>} : vector<8x330xbf16>, vector<330x128xbf16>, vector<8x128xf32> -> vector<8x128xf32>
    %c0_6 = arith.constant 0 : index
    %c0_7 = arith.constant 0 : index
    %10 = vector.load %arg6[%c0_6, %c0_7] : memref<8x128xf32, #tpu.memory_space<vmem>>, vector<1x128xf32>
    %11 = vector.broadcast %10 : vector<1x128xf32> to vector<8x128xf32>
    %12 = arith.addf %9, %11 : vector<8x128xf32>
    %cst_8 = arith.constant 0.000000e+00 : f32
    %13 = vector.broadcast %cst_8 : f32 to vector<8x128xf32>
    %14 = arith.maximumf %12, %13 : vector<8x128xf32>
    %15 = arith.truncf %14 : vector<8x128xf32> to vector<8x128xbf16>
    %c0_9 = arith.constant 0 : index
    %c0_10 = arith.constant 0 : index
    %c0_11 = arith.constant 0 : index
    %16 = vector.load %arg4[%c0_9, %c0_10, %c0_11] : memref<3x128x128xbf16, #tpu.memory_space<vmem>>, vector<1x128x128xbf16>
    %17 = vector.shape_cast %16 : vector<1x128x128xbf16> to vector<128x128xbf16>
    %cst_12 = arith.constant dense<0.000000e+00> : vector<8x128xf32>
    %18 = tpu.matmul %15, %17, %cst_12 {dimension_numbers = #tpu.dot_dimension_numbers<[1], [0], [0], [1], [0, 0, 1, 1], [], []>} : vector<8x128xbf16>, vector<128x128xbf16>, vector<8x128xf32> -> vector<8x128xf32>
    %c1_13 = arith.constant 1 : index
    %c0_14 = arith.constant 0 : index
    %19 = vector.load %arg6[%c1_13, %c0_14] : memref<8x128xf32, #tpu.memory_space<vmem>>, vector<1x128xf32>
    %20 = vector.broadcast %19 : vector<1x128xf32> to vector<8x128xf32>
    %21 = arith.addf %18, %20 : vector<8x128xf32>
    %cst_15 = arith.constant 0.000000e+00 : f32
    %22 = vector.broadcast %cst_15 : f32 to vector<8x128xf32>
    %23 = arith.maximumf %21, %22 : vector<8x128xf32>
    %24 = arith.truncf %23 : vector<8x128xf32> to vector<8x128xbf16>
    %c1_16 = arith.constant 1 : index
    %c0_17 = arith.constant 0 : index
    %c0_18 = arith.constant 0 : index
    %25 = vector.load %arg4[%c1_16, %c0_17, %c0_18] : memref<3x128x128xbf16, #tpu.memory_space<vmem>>, vector<1x128x128xbf16>
    %26 = vector.shape_cast %25 : vector<1x128x128xbf16> to vector<128x128xbf16>
    %cst_19 = arith.constant dense<0.000000e+00> : vector<8x128xf32>
    %27 = tpu.matmul %24, %26, %cst_19 {dimension_numbers = #tpu.dot_dimension_numbers<[1], [0], [0], [1], [0, 0, 1, 1], [], []>} : vector<8x128xbf16>, vector<128x128xbf16>, vector<8x128xf32> -> vector<8x128xf32>
    %c2 = arith.constant 2 : index
    %c0_20 = arith.constant 0 : index
    %28 = vector.load %arg6[%c2, %c0_20] : memref<8x128xf32, #tpu.memory_space<vmem>>, vector<1x128xf32>
    %29 = vector.broadcast %28 : vector<1x128xf32> to vector<8x128xf32>
    %30 = arith.addf %27, %29 : vector<8x128xf32>
    %cst_21 = arith.constant 0.000000e+00 : f32
    %31 = vector.broadcast %cst_21 : f32 to vector<8x128xf32>
    %32 = arith.maximumf %30, %31 : vector<8x128xf32>
    %33 = arith.truncf %32 : vector<8x128xf32> to vector<8x128xbf16>
    %c2_22 = arith.constant 2 : index
    %c0_23 = arith.constant 0 : index
    %c0_24 = arith.constant 0 : index
    %34 = vector.load %arg4[%c2_22, %c0_23, %c0_24] : memref<3x128x128xbf16, #tpu.memory_space<vmem>>, vector<1x128x128xbf16>
    %35 = vector.shape_cast %34 : vector<1x128x128xbf16> to vector<128x128xbf16>
    %cst_25 = arith.constant dense<0.000000e+00> : vector<8x128xf32>
    %36 = tpu.matmul %33, %35, %cst_25 {dimension_numbers = #tpu.dot_dimension_numbers<[1], [0], [0], [1], [0, 0, 1, 1], [], []>} : vector<8x128xbf16>, vector<128x128xbf16>, vector<8x128xf32> -> vector<8x128xf32>
    %c3 = arith.constant 3 : index
    %c0_26 = arith.constant 0 : index
    %37 = vector.load %arg6[%c3, %c0_26] : memref<8x128xf32, #tpu.memory_space<vmem>>, vector<1x128xf32>
    %38 = vector.broadcast %37 : vector<1x128xf32> to vector<8x128xf32>
    %39 = arith.addf %36, %38 : vector<8x128xf32>
    %cst_27 = arith.constant 0.000000e+00 : f32
    %40 = vector.broadcast %cst_27 : f32 to vector<8x128xf32>
    %41 = arith.maximumf %39, %40 : vector<8x128xf32>
    %42 = arith.truncf %41 : vector<8x128xf32> to vector<8x128xbf16>
    %c0_28 = arith.constant 0 : index
    %c0_29 = arith.constant 0 : index
    %43 = vector.load %arg5[%c0_28, %c0_29] : memref<128x128xbf16, #tpu.memory_space<vmem>>, vector<128x128xbf16>
    %cst_30 = arith.constant dense<0.000000e+00> : vector<8x128xf32>
    %44 = tpu.matmul %42, %43, %cst_30 {dimension_numbers = #tpu.dot_dimension_numbers<[1], [0], [0], [1], [0, 0, 1, 1], [], []>} : vector<8x128xbf16>, vector<128x128xbf16>, vector<8x128xf32> -> vector<8x128xf32>
    %c4 = arith.constant 4 : index
    %c0_31 = arith.constant 0 : index
    %45 = vector.load %arg6[%c4, %c0_31] : memref<8x128xf32, #tpu.memory_space<vmem>>, vector<1x128xf32>
    %46 = vector.broadcast %45 : vector<1x128xf32> to vector<8x128xf32>
    %47 = arith.addf %44, %46 : vector<8x128xf32>
    %cst_32 = arith.constant dense<0xFF800000> : vector<8xf32>
    %48 = vector.multi_reduction <maximumf>, %47, %cst_32 [1] : vector<8x128xf32> to vector<8xf32>
    %49 = vector.shape_cast %48 : vector<8xf32> to vector<8x1xf32>
    %50 = vector.broadcast %49 : vector<8x1xf32> to vector<8x128xf32>
    %51 = arith.subf %47, %50 : vector<8x128xf32>
    %52 = math.exp %51 : vector<8x128xf32>
    %cst_33 = arith.constant dense<0.000000e+00> : vector<8xf32>
    %53 = vector.multi_reduction <add>, %52, %cst_33 [1] : vector<8x128xf32> to vector<8xf32>
    %54 = vector.shape_cast %53 : vector<8xf32> to vector<8x1xf32>
    %55 = math.log %54 : vector<8x1xf32>
    %56 = arith.addf %55, %49 : vector<8x1xf32>
    %57 = vector.broadcast %56 : vector<8x1xf32> to vector<8x128xf32>
    %58 = arith.subf %47, %57 : vector<8x128xf32>
    %c0_34 = arith.constant 0 : index
    %c0_35 = arith.constant 0 : index
    %59 = vector.load %arg7[%c0_34, %c0_35] : memref<8x128xf32, #tpu.memory_space<vmem>>, vector<8x128xf32>
    tpu.vector_store %arg7[%c0_34, %c0_35], %58 {strides = array<i32>} : memref<8x128xf32, #tpu.memory_space<vmem>>, vector<8x128xf32>,
    return
  }
  func.func @transform_0(%arg0: i32) -> (i32, i32) {
    %c0_i32 = arith.constant 0 : i32
    %c0_i32_0 = arith.constant 0 : i32
    return %arg0, %c0_i32 : i32, i32
  }
  func.func @transform_1(%arg0: i32) -> (i32, i32) {
    %c0_i32 = arith.constant 0 : i32
    %c0_i32_0 = arith.constant 0 : i32
    %c0_i32_1 = arith.constant 0 : i32
    return %c0_i32, %c0_i32_0 : i32, i32
  }
  func.func @transform_2(%arg0: i32) -> (i32, i32) {
    %c0_i32 = arith.constant 0 : i32
    %c0_i32_0 = arith.constant 0 : i32
    %c0_i32_1 = arith.constant 0 : i32
    return %c0_i32, %c0_i32_0 : i32, i32
  }
  func.func @transform_3(%arg0: i32) -> (i32, i32, i32) {
    %c0_i32 = arith.constant 0 : i32
    %c0_i32_0 = arith.constant 0 : i32
    %c0_i32_1 = arith.constant 0 : i32
    %c0_i32_2 = arith.constant 0 : i32
    return %c0_i32, %c0_i32_0, %c0_i32_1 : i32, i32, i32
  }
  func.func @transform_4(%arg0: i32) -> (i32, i32) {
    %c0_i32 = arith.constant 0 : i32
    %c0_i32_0 = arith.constant 0 : i32
    %c0_i32_1 = arith.constant 0 : i32
    return %c0_i32, %c0_i32_0 : i32, i32
  }
  func.func @transform_5(%arg0: i32) -> (i32, i32) {
    %c0_i32 = arith.constant 0 : i32
    %c0_i32_0 = arith.constant 0 : i32
    %c0_i32_1 = arith.constant 0 : i32
    return %c0_i32, %c0_i32_0 : i32, i32
  }
  func.func @transform_6(%arg0: i32) -> (i32, i32) {
    %c0_i32 = arith.constant 0 : i32
    %c0_i32_0 = arith.constant 0 : i32
    return %arg0, %c0_i32 : i32, i32
  }
}

</mosaic_0001>

<bundles_post_ra>
// kernel: tpu_custom_call.1
= control target key start
LH: loop header
LB: loop body
LE: loop exit
PB: predicated region body
PF: predicated region fallthrough
CT: control target
= control target key end

     0   :  { %11 = vsyncpa [#allocation3], 0  ;;  %s1484_s0 = inlined_call_operand.hbm [shape: f32[8,330], index: 0, kind: input, shape index: {}]   ;;  %s1485_s1 = inlined_call_operand.hbm [shape: f32[2,330], index: 1, kind: input, shape index: {}]   ;;  %s1486_s2 = inlined_call_operand.hbm [shape: bf16[330,128], index: 2, kind: input, shape index: {}]   ;;  %s1487_s3 = inlined_call_operand.hbm [shape: bf16[3,128,128], index: 3, kind: input, shape index: {}]   ;;  %s1488_s4 = inlined_call_operand.hbm [shape: bf16[128,128], index: 4, kind: input, shape index: {}]   ;;  %s1489_s5 = inlined_call_operand.vmem [shape: f32[8,128], index: 5, kind: input, shape index: {}]   ;;  %s1490_s6 = inlined_call_operand.hbm [shape: f32[8,128], index: 6, kind: output, shape index: {}]  }
   0x1   :  { %12 = vsyncpa [#allocation6], 0 }
   0x2   :  { %13 = vsyncpa [#allocation9], 0 }
   0x3   :  { %14 = vsyncpa [#allocation4], 0  ;;  %s1295_s21 = smov [#allocation5]   ;;  %s1155_s25 = scalar_lea.hbm %s1485_s1, 96 }
   0x4   :  { %s31_s22 = sshll.u32 %s1295_s21, 4  ;;  %p1156_p0 = scmp.ne.s32.totalorder %s1485_s1, %s1155_s25  ;;  %s32_s22 = int_to_ptr.vmem [resolvable:$true] %s31_s22 }
   0x5   :  { %p1159_p1 = scmp.lt.u32.totalorder %s1155_s25, %s1485_s1 }
   0x7   :  { %p1161_p2 = pnand %p1159_p1, %p1156_p0 }
   0x9   :  { %1164 = shalt.err (!%p1161_p2)
}
   0xa   :  { %s1165_s30 = scalar_lea.vmem %s32_s22, 96  ;;  %p1170_p4 = scmp.lt.s32.totalorder %s32_s22, %s32_s22 }
   0xb   :  { %p1166_p3 = scmp.ne.s32.totalorder %s32_s22, %s1165_s30  ;;  %p1171_p5 = scmp.lt.s32.totalorder %s1165_s30, %s1165_s30 }
   0xd   :  { %p1172_p6 = por %p1171_p5, %p1170_p4 }
   0xf   :  { %p1173_p7 = pnand %p1172_p6, %p1166_p3 }
  0x11   :  { %1176 = shalt.err (!%p1173_p7)
}
  0x12   :  { %34 = dma.hbm_to_vmem [thread:$0]  %s1485_s1, 96, %s32_s22, [#allocation6]  }
  0x13   :  { %s1296_s9 = smov [#allocation8]   ;;  %s1297_s11 = smov [#allocation2]  }
  0x14   :  { %s52_s10 = sshll.u32 %s1296_s9, 4  ;;  %s21_s12 = sshll.u32 %s1297_s11, 4  ;;  %s53_s10 = int_to_ptr.vmem [resolvable:$true] %s52_s10  ;;  %s22_s12 = int_to_ptr.vmem [resolvable:$true] %s21_s12 }
  0x15   :  { %s1177_s15 = scalar_lea.hbm %s1487_s3, 3072 }
  0x16   :  { %p1178_p8 = scmp.ne.s32.totalorder %s1487_s3, %s1177_s15  ;;  %p1181_p9 = scmp.lt.u32.totalorder %s1177_s15, %s1487_s3 }
  0x18   :  { %p1183_p10 = pnand %p1181_p9, %p1178_p8 }
  0x1a   :  { %1186 = shalt.err (!%p1183_p10)
}
  0x1b   :  { %s1187_s1 = scalar_lea.vmem %s53_s10, 3072  ;;  %p1192_p12 = scmp.lt.s32.totalorder %s53_s10, %s53_s10 }
  0x1c   :  { %p1188_p11 = scmp.ne.s32.totalorder %s53_s10, %s1187_s1  ;;  %p1193_p13 = scmp.lt.s32.totalorder %s1187_s1, %s1187_s1 }
  0x1e   :  { %p1194_p0 = por %p1193_p13, %p1192_p12 }
  0x20   :  { %p1195_p1 = pnand %p1194_p0, %p1188_p11 }
  0x22   :  { %1198 = shalt.err (!%p1195_p1)
}
  0x23   :  { %s1298_s20 = smov 64   ;;  %s1299_s21 = smov 4  }
  0x24   :  { %58 = dma.hbm_to_vmem [thread:$0]  %s1487_s3, 3072, %s53_s10, [#allocation9], %s1298_s20, %s1298_s20, %s1299_s21  }
  0x25   :  { %s1199_s26 = scalar_lea.hbm %s1484_s0, 384 }
  0x26   :  { %p1200_p2 = scmp.ne.s32.totalorder %s1484_s0, %s1199_s26  ;;  %p1203_p3 = scmp.lt.u32.totalorder %s1199_s26, %s1484_s0 }
  0x28   :  { %p1205_p4 = pnand %p1203_p3, %p1200_p2 }
  0x2a   :  { %1208 = shalt.err (!%p1205_p4)
}
  0x2b   :  { %s1209_s7 = scalar_lea.vmem %s22_s12, 384  ;;  %p1214_p6 = scmp.lt.s32.totalorder %s22_s12, %s22_s12 }
  0x2c   :  { %p1210_p5 = scmp.ne.s32.totalorder %s22_s12, %s1209_s7  ;;  %p1215_p7 = scmp.lt.s32.totalorder %s1209_s7, %s1209_s7 }
  0x2e   :  { %p1216_p8 = por %p1215_p7, %p1214_p6 }
  0x30   :  { %p1217_p9 = pnand %p1216_p8, %p1210_p5 }
  0x32   :  { %1220 = shalt.err (!%p1217_p9)
}
  0x33   :  { %24 = dma.hbm_to_vmem [thread:$0]  %s1484_s0, 384, %s22_s12, [#allocation3]  }
  0x34   :  { %s1300_s9 = smov [#allocation7]   ;;  %s1301_s11 = smov [#allocation10]  }
  0x35   :  { %s40_s10 = sshll.u32 %s1300_s9, 4  ;;  %s64_s13 = sshll.u32 %s1301_s11, 4  ;;  %s41_s10 = int_to_ptr.vmem [resolvable:$true] %s40_s10  ;;  %s65_s13 = int_to_ptr.vmem [resolvable:$true] %s64_s13 }
  0x36   :  { %s1221_s16 = scalar_lea.hbm %s1486_s2, 2688 }
  0x37   :  { %p1222_p10 = scmp.ne.s32.totalorder %s1486_s2, %s1221_s16  ;;  %p1225_p11 = scmp.lt.u32.totalorder %s1221_s16, %s1486_s2 }
  0x39   :  { %p1227_p12 = pnand %p1225_p11, %p1222_p10 }
  0x3b   :  { %1230 = shalt.err (!%p1227_p12)
}
  0x3c   :  { %s1231_s0 = scalar_lea.vmem %s41_s10, 2688  ;;  %p1236_p0 = scmp.lt.s32.totalorder %s41_s10, %s41_s10 }
  0x3d   :  { %p1232_p13 = scmp.ne.s32.totalorder %s41_s10, %s1231_s0  ;;  %p1237_p1 = scmp.lt.s32.totalorder %s1231_s0, %s1231_s0 }
  0x3f   :  { %p1238_p2 = por %p1237_p1, %p1236_p0 }
  0x41   :  { %p1239_p3 = pnand %p1238_p2, %p1232_p13 }
  0x43   :  { %1242 = shalt.err (!%p1239_p3)
}
  0x44   :  { %46 = dma.hbm_to_vmem [thread:$0]  %s1486_s2, 2688, %s41_s10, [#allocation6], %s1298_s20, %s1298_s20, %s1299_s21  }
  0x45   :  { %s1243_s25 = scalar_lea.hbm %s1488_s4, 1024 }
  0x46   :  { %p1244_p4 = scmp.ne.s32.totalorder %s1488_s4, %s1243_s25  ;;  %p1247_p5 = scmp.lt.u32.totalorder %s1243_s25, %s1488_s4 }
  0x48   :  { %p1249_p6 = pnand %p1247_p5, %p1244_p4 }
  0x4a   :  { %1252 = shalt.err (!%p1249_p6)
}
  0x4b   :  { %s1253_s30 = scalar_lea.vmem %s65_s13, 1024  ;;  %p1258_p8 = scmp.lt.s32.totalorder %s65_s13, %s65_s13 }
  0x4c   :  { %p1254_p7 = scmp.ne.s32.totalorder %s65_s13, %s1253_s30  ;;  %p1259_p9 = scmp.lt.s32.totalorder %s1253_s30, %s1253_s30 }
  0x4e   :  { %p1260_p10 = por %p1259_p9, %p1258_p8 }
  0x50   :  { %p1261_p11 = pnand %p1260_p10, %p1254_p7 }
  0x52   :  { %1264 = shalt.err (!%p1261_p11)
}
  0x53   :  { %70 = dma.hbm_to_vmem [thread:$0]  %s1488_s4, 1024, %s65_s13, [#allocation9], %s1298_s20, %s1298_s20, %s1299_s21  }
  0x54   :  { %1287 = dma.done.wait [#allocation3], 384  }
  0x55   :  { %1288 = vsyncadd [#allocation3], 4294966912 }
  0x56   :  { %1289 = dma.done.wait [#allocation6], 2784  }
  0x57   :  { %1290 = vsyncadd [#allocation6], 4294964512 }
  0x58   :  { %1291 = dma.done.wait [#allocation9], 4096  }
  0x59   :  { %1292 = vsyncadd [#allocation9], 4294963200  ;;  %v1302_v0 = vmov 0.0   ;;  %vm1303_vm0 = vmmov 0   ;;  %v1098_v1 = vld [vmem:[#allocation7 + $0x40] sm:$0xff]   ;;  %v1100_v3 = vld [vmem:[#allocation7 + $0x48] sm:$0xff]   ;;  %v94_v8 = vlaneseq }
  0x5a   :  { %994 = vmatprep.subr.bf16.mxu1 %v1302_v0  ;;  %1004 = vmatprep.mubr.msk.bf16.mxu1 %vm1303_vm0, %v1302_v0  ;;  %v1099_v2 = vld [vmem:[#allocation7] sm:$0xff]   ;;  %v1101_v4 = vld [vmem:[#allocation7 + $0x8] sm:$0xff]   ;;  %v1102_v5 = vld [vmem:[#allocation7 + $0x50] sm:$0xff]   ;;  %vm312_vm1 = vcmask 1044480   ;;  %vm308_vm2 = vcmask 605184   ;;  %s1304_s15 = smov [#allocation11]  }
  0x5b   :  { %930 = vmatprep.subr.bf16.mxu0 %v1098_v1  ;;  %v1103_v6 = vld [vmem:[#allocation7 + $0x10] sm:$0xff]   ;;  %v1104_v7 = vld [vmem:[#allocation7 + $0x58] sm:$0xff]   ;;  %v1106_v9 = vld [vmem:[#allocation7 + $0x80] sm:$0xff]   ;;  %v95_v12 = vshrl.u32 %v94_v8, 7  ;;  %s860_s16 = sshll.u32 %s1304_s15, 4  ;;  %s861_s16 = int_to_ptr.vmem [resolvable:$true] %s860_s16 }
  0x5c   :  { %931 = vmatpush3.bf16.msra.mxu0 %v1099_v2  ;;  %v1105_v10 = vld [vmem:[#allocation7 + $0x18] sm:$0xff]   ;;  %995 = vmatpush3.bf16.msra.mxu1 %v1106_v9  ;;  %v1109_v11 = vld [vmem:[#allocation7 + $0x88] sm:$0xff]   ;;  %v1107_v13 = vld [vmem:[#allocation7 + $0x60] sm:$0xff]   ;;  %p1270_p13 = scmp.lt.s32.totalorder %s861_s16, %s861_s16 }
  0x5d   :  { %932 = vmatprep.subr.bf16.mxu0 %v1100_v3  ;;  %996 = vmatprep.subr.bf16.mxu1 %v1302_v0  ;;  %v1112_v14 = vld [vmem:[#allocation7 + $0x90] sm:$0xff]   ;;  %v1108_v15 = vld [vmem:[#allocation7 + $0x20] sm:$0xff]   ;;  %v100_v16 = vsub.s32 1, %v95_v12  ;;  %v1110_v17 = vld [vmem:[#allocation7 + $0x68] sm:$0xff]   ;;  %v104_v18 = vsub.s32 2, %v95_v12  ;;  %v96_v20 = vsub.s32 0, %v95_v12 }
  0x5e   :  { %v1111_v19 = vld [vmem:[#allocation7 + $0x28] sm:$0xff]   ;;  %v1115_v21 = vld [vmem:[#allocation7 + $0x98] sm:$0xff]   ;;  %v1113_v22 = vld [vmem:[#allocation7 + $0x70] sm:$0xff]  }
  0x5f   :  { %v90_v23 = vld [vmem:[#allocation2 + $0x8] sm:$0xff]  ;;  %v92_v24 = vld [vmem:[#allocation5] ss:$2 sm:$0x7]  ;;  %v89_v28 = vld [vmem:[#allocation2] sm:$0xff] }
  0x60   :  { %933 = vmatpush3.bf16.msra.mxu0 %v1101_v4  ;;  %997 = vmatpush3.bf16.msra.mxu1 %v1109_v11  ;;  %v101_v25 = vrot.slane %v92_v24, %v100_v16  ;;  %v105_v26 = vrot.slane %v92_v24, %v104_v18  ;;  %v113_v27 = vld [vmem:[#allocation5 + $0x1] ss:$2 sm:$0x7]  ;;  %v97_v29 = vrot.slane %v92_v24, %v96_v20  ;;  %v1118_v32 = vld [vmem:[#allocation7 + $0xa0] sm:$0x1f]   ;;  %v91_v34 = vld [vmem:[#allocation2 + $0x10] sm:$0xff] }
  0x61   :  { %934 = vmatprep.subr.bf16.mxu0 %v1102_v5  ;;  %998 = vmatprep.subr.bf16.mxu1 %v1302_v0  ;;  %v122_v30 = vrot.slane %v113_v27, %v100_v16  ;;  %v126_v31 = vrot.slane %v113_v27, %v104_v18  ;;  %v118_v33 = vrot.slane %v113_v27, %v96_v20  ;;  %v1114_v35 = vld [vmem:[#allocation7 + $0x30] sm:$0xff]   ;;  %v1116_v39 = vld [vmem:[#allocation7 + $0x78] sm:$0xff]   ;;  %v314_v40 = vsel %vm312_vm1, %v1118_v32, 0  ;;  %v1119_v44 = vld [vmem:[#allocation8] sm:$0xff]  }
  0x62   :  { %v110_v36 = vsub.f32 %v90_v23, %v101_v25  ;;  %v109_v37 = vsub.f32 %v89_v28, %v97_v29  ;;  %v111_v38 = vsub.f32 %v91_v34, %v105_v26  ;;  %v1117_v45 = vld [vmem:[#allocation7 + $0x38] sm:$0xff]   ;;  %v1120_v48 = vld [vmem:[#allocation8 + $0x8] sm:$0xff]   ;;  %v1122_v51 = vld [vmem:[#allocation8 + $0x18] sm:$0xff]  }
  0x63   :  { %v1121_v50 = vld [vmem:[#allocation8 + $0x10] sm:$0xff]   ;;  %v1123_v52 = vld [vmem:[#allocation8 + $0x20] sm:$0xff]   ;;  %v1124_v53 = vld [vmem:[#allocation8 + $0x28] sm:$0xff]  }
  0x64   :  { %935 = vmatpush3.bf16.msra.mxu0 %v1103_v6  ;;  %999 = vmatpush3.bf16.msra.mxu1 %v1112_v14  ;;  %v131_v41 = vmul.f32 %v122_v30, %v110_v36  ;;  %v132_v42 = vmul.f32 %v126_v31, %v111_v38  ;;  %v130_v43 = vmul.f32 %v118_v33, %v109_v37  ;;  %v1125_v54 = vld [vmem:[#allocation8 + $0x30] sm:$0xff]   ;;  %v1126_v55 = vld [vmem:[#allocation8 + $0x38] sm:$0xff]   ;;  %v1127_v56 = vld [vmem:[#allocation8 + $0x40] sm:$0xff]  }
  0x65   :  { %936 = vmatprep.subr.bf16.mxu0 %v1104_v7  ;;  %1000 = vmatprep.subr.bf16.mxu1 %v1302_v0  ;;  %v1128_v57 = vld [vmem:[#allocation8 + $0x48] sm:$0xff]   ;;  %v1129_v58 = vld [vmem:[#allocation8 + $0x50] sm:$0xff]   ;;  %v1130_v59 = vld [vmem:[#allocation8 + $0x58] sm:$0xff]  }
  0x66   :  { %v134_v46 = vpack.c.bf16 %v131_v41, %v131_v41  ;;  %v135_v47 = vpack.c.bf16 %v132_v42, %v132_v42  ;;  %v133_v49 = vpack.c.bf16 %v130_v43, %v130_v43  ;;  %v1131_v60 = vld [vmem:[#allocation8 + $0x60] sm:$0xff]   ;;  %v1132_v61 = vld [vmem:[#allocation8 + $0x68] sm:$0xff]   ;;  %v871_v5 = vld [vmem:[%s1489_s5] ss:$0 sm:$0xff] }
  0x67   :  { %v1134_v14 = vld [vmem:[#allocation8 + $0x78] sm:$0xff]   ;;  %v1136_v16 = vld [vmem:[#allocation8 + $0x88] sm:$0xff]   ;;  %v1141_v29 = vld [vmem:[#allocation8 + $0xb0] sm:$0xff]  }
  0x68   :  { %937 = vmatpush3.bf16.msra.mxu0 %v1105_v10  ;;  %1001 = vmatpush3.bf16.msra.mxu1 %v1115_v21  ;;  %v1138_v18 = vld [vmem:[#allocation8 + $0x98] sm:$0xff]   ;;  %v1140_v20 = vld [vmem:[#allocation8 + $0xa8] sm:$0xff]   ;;  %v1143_v31 = vld [vmem:[#allocation10] sm:$0xff]  }
  0x69   :  { %938 = vmatprep.subr.bf16.mxu0 %v1107_v13  ;;  %1002 = vmatprep.subr.bf16.mxu1 %v1302_v0  ;;  %v1133_v13 = vld [vmem:[#allocation8 + $0x70] sm:$0xff]   ;;  %v894_v21 = vld [vmem:[%s1489_s5 + $0x1] ss:$0 sm:$0xff]  ;;  %v1144_v32 = vld [vmem:[#allocation10 + $0x8] sm:$0xff]  }
  0x6a   :  { %348 = vmatprep.mubr.bf16.mxu0 %v134_v46  ;;  %v1142_v30 = vld [vmem:[#allocation8 + $0xb8] sm:$0xff]   ;;  %v1145_v33 = vld [vmem:[#allocation10 + $0x10] sm:$0xff]   ;;  %v1148_v36 = vld [vmem:[#allocation10 + $0x28] sm:$0xff]  }
  0x6b   :  { %v1146_v34 = vld [vmem:[#allocation10 + $0x18] sm:$0xff]  }
  0x6c   :  { %939 = vmatpush3.bf16.msra.mxu0 %v1108_v15  ;;  %1003 = vmatpush3.bf16.msra.mxu1 %v314_v40  ;;  %v1135_v15 = vld [vmem:[#allocation8 + $0x80] sm:$0xff]   ;;  %v903_v37 = vld [vmem:[%s1489_s5 + $0x2] ss:$0 sm:$0xff] }
  0x6d   :  { %940 = vmatprep.subr.bf16.mxu0 %v1110_v17  ;;  %1008 = vmatprep.subr.bf16.mxu1 %v1302_v0  ;;  %v1137_v17 = vld [vmem:[#allocation8 + $0x90] sm:$0xff]   ;;  %v1150_v46 = vld [vmem:[#allocation10 + $0x38] sm:$0xff]  }
  0x6f   :  { %1005 = vmatmul.mubr.msk.bf16.vlgmr.msra.gmra.mrb[0].mxu1 %vm308_vm2, %v135_v47  ;;  %v912_v47 = vld [vmem:[%s1489_s5 + $0x3] ss:$0 sm:$0xff] }
  0x70   :  { %941 = vmatpush3.bf16.msra.mxu0 %v1111_v19  ;;  %1009 = vmatpush3.bf16.msra.mxu1 %v1119_v44  ;;  %v1139_v19 = vld [vmem:[#allocation8 + $0xa0] sm:$0xff]  }
  0x71   :  { %942 = vmatprep.subr.bf16.mxu0 %v1113_v22  ;;  %1024 = vmatprep.mubr.msk.bf16.mxu1 %vm1303_vm0, %v1302_v0 }
  0x72   :  { %1010 = vmatprep.subr.bf16.mxu1 %v1302_v0 }
  0x74   :  { %943 = vmatpush3.bf16.msra.mxu0 %v1114_v35  ;;  %1011 = vmatpush3.bf16.msra.mxu1 %v1120_v48  ;;  %v1147_v35 = vld [vmem:[#allocation10 + $0x20] sm:$0xff]  }
  0x75   :  { %944 = vmatprep.subr.bf16.mxu0 %v1116_v39  ;;  %1012 = vmatprep.subr.bf16.mxu1 %v1302_v0 }
  0x78   :  { %945 = vmatpush3.bf16.msra.mxu0 %v1117_v45  ;;  %1013 = vmatpush3.bf16.msra.mxu1 %v1121_v50  ;;  %v1149_v45 = vld [vmem:[#allocation10 + $0x30] sm:$0xff]  }
  0x79   :  { %1028 = vmatprep.subr.bf16.mxu0 %v1302_v0  ;;  %1014 = vmatprep.subr.bf16.mxu1 %v1302_v0 }
  0x7b   :  { %349 = vmatmul.mubr.bf16.vlgmr.msra.gmra.mrb[0].mxu0 %v133_v49 }
  0x7c   :  { %1044 = vmatprep.mubr.msk.bf16.mxu0 %vm1303_vm0, %v1302_v0  ;;  %1015 = vmatpush3.bf16.msra.mxu1 %v1122_v51 }
  0x7d   :  { %1016 = vmatprep.subr.bf16.mxu1 %v1302_v0  ;;  %1029 = vmatpush3.bf16.msra.mxu0 %v1127_v56 }
  0x7e   :  { %1030 = vmatprep.subr.bf16.mxu0 %v1302_v0 }
  0x80   :  { %1017 = vmatpush3.bf16.msra.mxu1 %v1123_v52 }
  0x81   :  { %1018 = vmatprep.subr.bf16.mxu1 %v1302_v0  ;;  %1031 = vmatpush3.bf16.msra.mxu0 %v1128_v57 }
  0x82   :  { %1032 = vmatprep.subr.bf16.mxu0 %v1302_v0 }
  0x84   :  { %1019 = vmatpush3.bf16.msra.mxu1 %v1124_v53 }
  0x85   :  { %1020 = vmatprep.subr.bf16.mxu1 %v1302_v0  ;;  %1033 = vmatpush3.bf16.msra.mxu0 %v1129_v58 }
  0x86   :  { %1034 = vmatprep.subr.bf16.mxu0 %v1302_v0 }
  0x88   :  { %1021 = vmatpush3.bf16.msra.mxu1 %v1125_v54 }
  0x89   :  { %1022 = vmatprep.subr.bf16.mxu1 %v1302_v0  ;;  %1035 = vmatpush3.bf16.msra.mxu0 %v1130_v59 }
  0x8a   :  { %1036 = vmatprep.subr.bf16.mxu0 %v1302_v0 }
  0x8c   :  { %1023 = vmatpush3.bf16.msra.mxu1 %v1126_v55  ;;  %v921_v55 = vld [vmem:[%s1489_s5 + $0x4] ss:$0 sm:$0xff]  ;;  %s1265_s5 = scalar_lea.vmem %s861_s16, 128 }
  0x8d   :  { %1048 = vmatprep.subr.bf16.mxu1 %v1302_v0  ;;  %1037 = vmatpush3.bf16.msra.mxu0 %v1131_v60  ;;  %p1266_p12 = scmp.ne.s32.totalorder %s861_s16, %s1265_s5  ;;  %p1271_p0 = scmp.lt.s32.totalorder %s1265_s5, %s1265_s5 }
  0x8e   :  { %1038 = vmatprep.subr.bf16.mxu0 %v1302_v0 }
  0x8f   :  { %p1272_p1 = por %p1271_p0, %p1270_p13 }
  0x91   :  { %1039 = vmatpush3.bf16.msra.mxu0 %v1132_v61  ;;  %p1273_p2 = pnand %p1272_p1, %p1266_p12 }
  0x92   :  { %1040 = vmatprep.subr.bf16.mxu0 %v1302_v0 }
  0x95   :  { %1041 = vmatpush3.bf16.msra.mxu0 %v1133_v13 }
  0x96   :  { %1042 = vmatprep.subr.bf16.mxu0 %v1302_v0 }
  0x99   :  { %1043 = vmatpush3.bf16.msra.mxu0 %v1134_v14 }
  0x9a   :  { %1068 = vmatprep.subr.bf16.mxu0 %v1302_v0 }
 0x142   :  { %v390_v62 = vpop.f32.mrb[0].mxu1 }
 0x143   :  { %v1006_v63 = vpop.f32.mrb[1].mxu1 }
 0x144   :  { %v393_v1 = vpop.f32.mrb[2].mxu1 }
 0x145   :  { %v1007_v2 = vpop.f32.mrb[3].mxu1 }
 0x14e   :  { %v946_v3 = vpop.f32.mrb[0].mxu0 }
 0x14f   :  { %v947_v4 = vpop.f32.mrb[1].mxu0 }
 0x150   :  { %v948_v6 = vadd.f32 %v947_v4, %v946_v3  ;;  %v949_v7 = vpop.f32.mrb[2].mxu0 }
 0x151   :  { %v950_v8 = vpop.f32.mrb[3].mxu0 }
 0x152   :  { %v351_v9 = vadd.f32 %v948_v6, %v871_v5 }
 0x154   :  { %v391_v10 = vadd.f32 %v390_v62, %v351_v9 }
 0x156   :  { %v396_v11 = vmax.f32 %v391_v10, 0.0 }
 0x158   :  { %v397_v12 = vpack.c.bf16 %v396_v11, %v396_v11 }
 0x15a   :  { %1025 = vmatmul.mubr.bf16.vlgmr.msra.gmra.mrb[4].mxu1 %v397_v12 }
 0x15b   :  { %1064 = vmatprep.mubr.msk.bf16.mxu1 %vm1303_vm0, %v1302_v0  ;;  %1049 = vmatpush3.bf16.msra.mxu1 %v1135_v15 }
 0x15c   :  { %1050 = vmatprep.subr.bf16.mxu1 %v1302_v0 }
 0x15f   :  { %1051 = vmatpush3.bf16.msra.mxu1 %v1136_v16 }
 0x160   :  { %1052 = vmatprep.subr.bf16.mxu1 %v1302_v0 }
 0x163   :  { %1053 = vmatpush3.bf16.msra.mxu1 %v1137_v17 }
 0x164   :  { %1054 = vmatprep.subr.bf16.mxu1 %v1302_v0 }
 0x167   :  { %1055 = vmatpush3.bf16.msra.mxu1 %v1138_v18 }
 0x168   :  { %1056 = vmatprep.subr.bf16.mxu1 %v1302_v0 }
 0x16b   :  { %1057 = vmatpush3.bf16.msra.mxu1 %v1139_v19 }
 0x16c   :  { %1058 = vmatprep.subr.bf16.mxu1 %v1302_v0 }
 0x16f   :  { %1059 = vmatpush3.bf16.msra.mxu1 %v1140_v20 }
 0x170   :  { %1060 = vmatprep.subr.bf16.mxu1 %v1302_v0 }
 0x173   :  { %1061 = vmatpush3.bf16.msra.mxu1 %v1141_v29 }
 0x174   :  { %1062 = vmatprep.subr.bf16.mxu1 %v1302_v0 }
 0x177   :  { %1063 = vmatpush3.bf16.msra.mxu1 %v1142_v30 }
 0x22d   :  { %v501_v22 = vpop.f32.mrb[4].mxu1 }
 0x22e   :  { %v502_v23 = vadd.f32 %v894_v21, %v501_v22  ;;  %v1026_v24 = vpop.f32.mrb[5].mxu1 }
 0x22f   :  { %v504_v25 = vpop.f32.mrb[6].mxu1 }
 0x230   :  { %v507_v26 = vmax.f32 %v502_v23, 0.0  ;;  %v1027_v27 = vpop.f32.mrb[7].mxu1 }
 0x232   :  { %v508_v28 = vpack.c.bf16 %v507_v26, %v507_v26 }
 0x234   :  { %1045 = vmatmul.mubr.bf16.vlgmr.msra.gmra.mrb[4].mxu0 %v508_v28 }
 0x235   :  { %1084 = vmatprep.mubr.msk.bf16.mxu0 %vm1303_vm0, %v1302_v0  ;;  %1069 = vmatpush3.bf16.msra.mxu0 %v1143_v31 }
 0x236   :  { %1070 = vmatprep.subr.bf16.mxu0 %v1302_v0 }
 0x239   :  { %1071 = vmatpush3.bf16.msra.mxu0 %v1144_v32 }
 0x23a   :  { %1072 = vmatprep.subr.bf16.mxu0 %v1302_v0 }
 0x23d   :  { %1073 = vmatpush3.bf16.msra.mxu0 %v1145_v33 }
 0x23e   :  { %1074 = vmatprep.subr.bf16.mxu0 %v1302_v0 }
 0x241   :  { %1075 = vmatpush3.bf16.msra.mxu0 %v1146_v34 }
 0x242   :  { %1076 = vmatprep.subr.bf16.mxu0 %v1302_v0 }
 0x245   :  { %1077 = vmatpush3.bf16.msra.mxu0 %v1147_v35 }
 0x246   :  { %1078 = vmatprep.subr.bf16.mxu0 %v1302_v0 }
 0x249   :  { %1079 = vmatpush3.bf16.msra.mxu0 %v1148_v36 }
 0x24a   :  { %1080 = vmatprep.subr.bf16.mxu0 %v1302_v0 }
 0x24d   :  { %1081 = vmatpush3.bf16.msra.mxu0 %v1149_v45 }
 0x24e   :  { %1082 = vmatprep.subr.bf16.mxu0 %v1302_v0 }
 0x251   :  { %1083 = vmatpush3.bf16.msra.mxu0 %v1150_v46 }
 0x307   :  { %v613_v38 = vpop.f32.mrb[4].mxu0 }
 0x308   :  { %v614_v39 = vadd.f32 %v903_v37, %v613_v38  ;;  %v1046_v40 = vpop.f32.mrb[5].mxu0 }
 0x309   :  { %v616_v41 = vpop.f32.mrb[6].mxu0 }
 0x30a   :  { %v619_v42 = vmax.f32 %v614_v39, 0.0  ;;  %v1047_v43 = vpop.f32.mrb[7].mxu0 }
 0x30c   :  { %v620_v44 = vpack.c.bf16 %v619_v42, %v619_v42 }
 0x30e   :  { %1065 = vmatmul.mubr.bf16.vlgmr.msra.gmra.mrb[8].mxu1 %v620_v44 }
 0x3e1   :  { %v725_v48 = vpop.f32.mrb[8].mxu1 }
 0x3e2   :  { %v726_v49 = vadd.f32 %v912_v47, %v725_v48  ;;  %v1066_v50 = vpop.f32.mrb[9].mxu1 }
 0x3e3   :  { %v728_v51 = vpop.f32.mrb[10].mxu1 }
 0x3e4   :  { %v731_v52 = vmax.f32 %v726_v49, 0.0  ;;  %v1067_v53 = vpop.f32.mrb[11].mxu1 }
 0x3e6   :  { %v732_v54 = vpack.c.bf16 %v731_v52, %v731_v52 }
 0x3e8   :  { %1085 = vmatmul.mubr.bf16.vlgmr.msra.gmra.mrb[8].mxu0 %v732_v54 }
 0x4bb   :  { %v836_v56 = vpop.f32.mrb[8].mxu0 }
 0x4bc   :  { %v837_v0 = vadd.f32 %v921_v55, %v836_v56  ;;  %v1086_v57 = vpop.f32.mrb[9].mxu0 }
 0x4bd   :  { %v839_v58 = vpop.f32.mrb[10].mxu0 }
 0x4be   :  { %842 = vmax.xlane.f32.xlu0 %v837_v0  ;;  %v1087_v59 = vpop.f32.mrb[11].mxu0 }
 0x54b   :  { %v843_v60 = vpop.xlane.xlu0 %842 }
 0x54c   :  { %v844_v61 = vsub.f32 %v837_v0, %v843_v60 }
 0x54e   :  { %v845_v62 = vmul.f32 1.442695, %v844_v61 }
 0x550   :  { %1151 = vpow2.f32 %v845_v62 }
 0x55a   :  { %v1152_v63 = vpop.eup %1151 }
 0x55b   :  { %847 = vadd.xlane.f32.xlu0 %v1152_v63 }
 0x5e8   :  { %v848_v1 = vpop.xlane.xlu0 %847 }
 0x5e9   :  { %1153 = vlog2.f32 %v848_v1 }
 0x5f3   :  { %v1154_v2 = vpop.eup %1153 }
 0x5f4   :  { %v850_v3 = vmul.f32 0.6931472, %v1154_v2 }
 0x5f6   :  { %v851_v4 = vadd.f32 %v850_v3, %v843_v60 }
 0x5f8   :  { %v852_v5 = vsub.f32 %v837_v0, %v851_v4 }
 0x5fa   :  { %853 = vst [vmem:[#allocation11] sm:$0xff] %v852_v5 }
 0x5fb   :  { %1276 = shalt.err (!%p1273_p2)
}
 0x5fc   :  { %s1277_s19 = scalar_lea.hbm %s1490_s6, 128 }
 0x5fd   :  { %p1278_p3 = scmp.ne.s32.totalorder %s1490_s6, %s1277_s19  ;;  %p1281_p4 = scmp.lt.u32.totalorder %s1277_s19, %s1490_s6 }
 0x5ff   :  { %p1283_p5 = pnand %p1281_p4, %p1278_p3 }
 0x601   :  { %1286 = shalt.err (!%p1283_p5)
}
 0x602   :  { %863 = dma.vmem_to_hbm [thread:$0]  %s861_s16, 128, %s1490_s6, [#allocation4]  }
 0x603   :  { %1293 = dma.done.wait [#allocation4], 128  }
 0x604   :  { %1294 = vsyncadd [#allocation4], 4294967168 }
 0x605   :  { %867 = vsyncpa [#allocation3], 1 }
 0x606   :  { %868 = vsyncpa [#allocation6], 1 }
 0x607   :  { %869 = vsyncpa [#allocation9], 1 }
 0x608   :  { %870 = vsyncpa [#allocation4], 1 }

</bundles_post_ra>
